<compile_context>
chip_gen: v5e
topology: v5e:2x2
jax: 0.10.0
libtpu: 0.0.40
codegen_flags: <defaults>
</compile_context>

<pallas_src>
import jax
import jax.numpy as jnp
from jax.experimental import pallas as pl
from jax.experimental.pallas import tpu as pltpu


_LANE = 128       # TPU lane width (last-dim alignment target)
_SUBLANE = 8      # f32 sublane packing (second-to-last dim alignment)


def _round_up(x, m):
    return ((x + m - 1) // m) * m


# ---------------------------------------------------------------------------
# Kernel: per-token NER classification head
#     logits = GELU(x @ W1 + b1) @ W2 + b2
# ---------------------------------------------------------------------------
def _ner_head_kernel(x_ref, w1_ref, b1_ref, w2_ref, b2_ref, out_ref):
    # x_ref  : [TILE_T, H_pad]  f32 token tile (cast to bf16 in-kernel)
    # w1_ref : [H_pad, H_pad]   bf16, VMEM-resident (constant block index)
    # b1_ref : [1, H_pad]       f32
    # w2_ref : [H_pad, L_pad]   bf16, VMEM-resident
    # b2_ref : [1, L_pad]       f32
    # out_ref: [TILE_T, L_pad]  bf16 (lane-dense: L_pad % 128 == 0)
    x = x_ref[...].astype(jnp.bfloat16)
    # First matmul on the MXU, f32 accumulation.
    h = jnp.dot(x, w1_ref[...], preferred_element_type=jnp.float32)
    # Bias + tanh-GELU epilogue in bf16 (VPU/EUP filler under MXU streaming);
    # result is directly the bf16 operand of the second matmul.
    h = jax.nn.gelu((h + b1_ref[...]).astype(jnp.bfloat16), approximate=True)
    # Second matmul (small N = L_pad), f32 accumulation.
    logits = jnp.dot(h, w2_ref[...], preferred_element_type=jnp.float32)
    out_ref[...] = (logits + b2_ref[...]).astype(out_ref.dtype)


# ---------------------------------------------------------------------------
# One-time parameter preparation (model init) — hoisted out of the per-call
# path so every forward pays zero weight padding/cast HBM traffic.
# ---------------------------------------------------------------------------
def prepare_ner_head_params(w1, b1, w2, b2):
    H = w1.shape[0]
    L = w2.shape[1]
    H_pad = _round_up(H, _LANE)
    L_pad = _round_up(L, _LANE)

    def pad2(a, rows, cols, dtype):
        a = a.astype(dtype)
        if a.shape == (rows, cols):
            return a
        return jnp.zeros((rows, cols), dtype).at[:a.shape[0], :a.shape[1]].set(a)

    return {
        "w1": pad2(w1, H_pad, H_pad, jnp.bfloat16),
        "b1": pad2(b1[None, :], 1, H_pad, jnp.float32),
        "w2": pad2(w2, H_pad, L_pad, jnp.bfloat16),
        "b2": pad2(b2[None, :], 1, L_pad, jnp.float32),
        "H": H, "L": L, "H_pad": H_pad, "L_pad": L_pad,
    }


def _pick_tile_t(T, cap):
    """Token tile: large enough to amortize the ~0.35us/step pipeline
    overhead (v6e/v7x), capped for v7x's 64 MiB VMEM, and shrunk for small
    inputs so grid >= 2 and the 'parallel' axis can shard across both v7x
    TensorCores instead of leaving one idle."""
    tile = min(cap, _round_up(T, _SUBLANE))
    if tile >= T and T > 2 * _SUBLANE:
        tile = max(_SUBLANE, _round_up(pl.cdiv(T, 2), _SUBLANE))
    return tile


def _build_head_call(T, H_pad, L_pad, tile_T, grid, single_buffer_weights):
    if single_buffer_weights:
        def const_spec(shape):
            # Constant block index -> DMA'd once and kept VMEM-resident;
            # single-buffer it to free the redundant second buffer's VMEM.
            return pl.BlockSpec(shape, lambda i: (0, 0),
                                pipeline_mode=pl.Buffered(1))
    else:
        def const_spec(shape):
            return pl.BlockSpec(shape, lambda i: (0, 0))

    return pl.pallas_call(
        _ner_head_kernel,
        out_shape=jax.ShapeDtypeStruct((T, L_pad), jnp.bfloat16),
        grid=grid,
        in_specs=[
            pl.BlockSpec((tile_T, H_pad), lambda i: (i, 0)),  # streamed tokens
            const_spec((H_pad, H_pad)),                       # resident W1
            const_spec((1, H_pad)),                           # resident b1
            const_spec((H_pad, L_pad)),                       # resident W2
            const_spec((1, L_pad)),                           # resident b2
        ],
        out_specs=pl.BlockSpec((tile_T, L_pad), lambda i: (i, 0)),
        compiler_params=pltpu.CompilerParams(
            # Independent token tiles -> megacore sharding on v7x.
            dimension_semantics=("parallel",),
            # Explicit limit: v5e's scoped default is only 16 MiB; stays well
            # under v7x's 64 MiB physical VMEM (~20 MiB used at TILE_T=1024).
            vmem_limit_bytes=48 * 1024 * 1024,
        ),
    )


def ner_forward(hidden_states, params, *, tile_t_cap=1024):
    """hidden_states: [B, S, H] (f32 or bf16) -> logits [B, S, L] f32.

    `params` comes from prepare_ner_head_params (weights pre-padded / cast).
    On v6e, tile_t_cap=2048 is also a reasonable setting to sweep.
    """
    B, S, H = hidden_states.shape
    assert H == params["H"], "hidden size mismatch with prepared params"
    L, H_pad, L_pad = params["L"], params["H_pad"], params["L_pad"]
    T = B * S

    # No padded/cast activation copy: ELECTRA H (768/1024) is already a
    # multiple of 128 so the reshape is free; bf16 cast happens in-kernel.
    x2d = hidden_states.reshape(T, H)
    if H_pad != H:  # toy / non-lane-aligned hidden sizes only
        x2d = jnp.pad(x2d, ((0, 0), (0, H_pad - H)))

    tile_T = _pick_tile_t(T, tile_t_cap)
    grid = (pl.cdiv(T, tile_T),)  # ragged last tile: OOB rows masked on store

    args = (x2d, params["w1"], params["b1"], params["w2"], params["b2"])
    try:
        out = _build_head_call(T, H_pad, L_pad, tile_T, grid, True)(*args)
    except Exception:
        # TODO(synk): pipeline_mode=pl.Buffered(1) unsupported on this jax
        # version; fall back to default double-buffered weight specs.
        out = _build_head_call(T, H_pad, L_pad, tile_T, grid, False)(*args)

    # Drop label padding, upcast bf16 logits, restore [B, S, L].
    return out[:, :L].astype(jnp.float32).reshape(B, S, L)


def _reference(hidden_states, w1, b1, w2, b2):
    """Pure-JAX reference with the kernel's dtype policy (bf16 operands,
    f32 MXU accumulation, bf16 GELU epilogue, bf16 output rounding)."""
    B, S, H = hidden_states.shape
    x = hidden_states.reshape(-1, H).astype(jnp.bfloat16)
    h = jnp.dot(x, w1.astype(jnp.bfloat16),
                preferred_element_type=jnp.float32) + b1.astype(jnp.float32)
    h = jax.nn.gelu(h.astype(jnp.bfloat16), approximate=True)
    logits = jnp.dot(h, w2.astype(jnp.bfloat16),
                     preferred_element_type=jnp.float32) + b2.astype(jnp.float32)
    logits = logits.astype(jnp.bfloat16).astype(jnp.float32)
    return logits.reshape(B, S, -1)


if __name__ == "__main__":
    # Small shapes consistent with a token-classification forward pass.
    B, S, H, L = 2, 8, 32, 8

    key = jax.random.PRNGKey(0)
    k_x, k_w1, k_b1, k_w2, k_b2 = jax.random.split(key, 5)

    hidden_states = jax.random.normal(k_x, (B, S, H), dtype=jnp.float32)
    w1 = jax.random.normal(k_w1, (H, H), dtype=jnp.float32) * 0.05
    b1 = jax.random.normal(k_b1, (H,), dtype=jnp.float32) * 0.01
    w2 = jax.random.normal(k_w2, (H, L), dtype=jnp.float32) * 0.05
    b2 = jax.random.normal(k_b2, (L,), dtype=jnp.float32) * 0.01

    # One-time weight prep (model init), then forward.
    params = prepare_ner_head_params(w1, b1, w2, b2)
    logits = ner_forward(hidden_states, params)
    jax.block_until_ready(logits)

    ref = _reference(hidden_states, w1, b1, w2, b2)
    assert logits.shape == (B, S, L)
    assert jnp.allclose(logits, ref, atol=2e-2, rtol=2e-2), (
        float(jnp.max(jnp.abs(logits - ref))))

    print("KERNEL_OK")
</pallas_src>

<mosaic_0001>
module attributes {stable_mosaic.version = 11 : i64} {
  func.func @_ner_head_kernel(%arg0: i32, %arg1: memref<16x128xf32, #tpu.memory_space<vmem>>, %arg2: memref<128x128xbf16, #tpu.memory_space<vmem>>, %arg3: memref<1x128xf32, #tpu.memory_space<vmem>>, %arg4: memref<128x128xbf16, #tpu.memory_space<vmem>>, %arg5: memref<1x128xf32, #tpu.memory_space<vmem>>, %arg6: memref<16x128xbf16, #tpu.memory_space<vmem>>) attributes {dimension_semantics = [#tpu.dimension_semantics<parallel>], iteration_bounds = array<i64: 1>, scalar_prefetch = 0 : i64, scratch_operands = 0 : i64, tpu.core_type = #tpu.core_type<tc>, window_params = [{transform_indices = @transform_0, window_bounds = array<i64: 16, 128>}, {pipeline_mode = #tpu.pipeline_mode<synchronous>, transform_indices = @transform_1, window_bounds = array<i64: 128, 128>}, {pipeline_mode = #tpu.pipeline_mode<synchronous>, transform_indices = @transform_2, window_bounds = array<i64: 1, 128>}, {pipeline_mode = #tpu.pipeline_mode<synchronous>, transform_indices = @transform_3, window_bounds = array<i64: 128, 128>}, {pipeline_mode = #tpu.pipeline_mode<synchronous>, transform_indices = @transform_4, window_bounds = array<i64: 1, 128>}, {transform_indices = @transform_5, window_bounds = array<i64: 16, 128>}]} {
    %c0 = arith.constant 0 : index
    %c0_0 = arith.constant 0 : index
    %0 = vector.load %arg1[%c0, %c0_0] : memref<16x128xf32, #tpu.memory_space<vmem>>, vector<16x128xf32>
    %1 = arith.truncf %0 : vector<16x128xf32> to vector<16x128xbf16>
    %c0_1 = arith.constant 0 : index
    %c0_2 = arith.constant 0 : index
    %2 = vector.load %arg2[%c0_1, %c0_2] : memref<128x128xbf16, #tpu.memory_space<vmem>>, vector<128x128xbf16>
    %cst = arith.constant dense<0.000000e+00> : vector<16x128xf32>
    %3 = tpu.matmul %1, %2, %cst {dimension_numbers = #tpu.dot_dimension_numbers<[1], [0], [0], [1], [0, 0, 1, 1], [], []>} : vector<16x128xbf16>, vector<128x128xbf16>, vector<16x128xf32> -> vector<16x128xf32>
    %c0_3 = arith.constant 0 : index
    %c0_4 = arith.constant 0 : index
    %4 = vector.load %arg3[%c0_3, %c0_4] : memref<1x128xf32, #tpu.memory_space<vmem>>, vector<1x128xf32>
    %5 = vector.broadcast %4 : vector<1x128xf32> to vector<16x128xf32>
    %6 = arith.addf %3, %5 : vector<16x128xf32>
    %7 = arith.truncf %6 : vector<16x128xf32> to vector<16x128xbf16>
    %8 = arith.mulf %7, %7 : vector<16x128xbf16>
    %9 = arith.mulf %7, %8 : vector<16x128xbf16>
    %cst_5 = arith.constant 4.467770e-02 : bf16
    %10 = vector.broadcast %cst_5 : bf16 to vector<16x128xbf16>
    %11 = arith.mulf %10, %9 : vector<16x128xbf16>
    %12 = arith.addf %7, %11 : vector<16x128xbf16>
    %cst_6 = arith.constant 7.968750e-01 : bf16
    %13 = vector.broadcast %cst_6 : bf16 to vector<16x128xbf16>
    %14 = arith.mulf %13, %12 : vector<16x128xbf16>
    %15 = math.tanh %14 : vector<16x128xbf16>
    %cst_7 = arith.constant 1.000000e+00 : bf16
    %16 = vector.broadcast %cst_7 : bf16 to vector<16x128xbf16>
    %17 = arith.addf %16, %15 : vector<16x128xbf16>
    %cst_8 = arith.constant 5.000000e-01 : bf16
    %18 = vector.broadcast %cst_8 : bf16 to vector<16x128xbf16>
    %19 = arith.mulf %18, %17 : vector<16x128xbf16>
    %20 = arith.mulf %7, %19 : vector<16x128xbf16>
    %c0_9 = arith.constant 0 : index
    %c0_10 = arith.constant 0 : index
    %21 = vector.load %arg4[%c0_9, %c0_10] : memref<128x128xbf16, #tpu.memory_space<vmem>>, vector<128x128xbf16>
    %cst_11 = arith.constant dense<0.000000e+00> : vector<16x128xf32>
    %22 = tpu.matmul %20, %21, %cst_11 {dimension_numbers = #tpu.dot_dimension_numbers<[1], [0], [0], [1], [0, 0, 1, 1], [], []>} : vector<16x128xbf16>, vector<128x128xbf16>, vector<16x128xf32> -> vector<16x128xf32>
    %c0_12 = arith.constant 0 : index
    %c0_13 = arith.constant 0 : index
    %23 = vector.load %arg5[%c0_12, %c0_13] : memref<1x128xf32, #tpu.memory_space<vmem>>, vector<1x128xf32>
    %24 = vector.broadcast %23 : vector<1x128xf32> to vector<16x128xf32>
    %25 = arith.addf %22, %24 : vector<16x128xf32>
    %26 = arith.truncf %25 : vector<16x128xf32> to vector<16x128xbf16>
    %c0_14 = arith.constant 0 : index
    %c0_15 = arith.constant 0 : index
    %27 = vector.load %arg6[%c0_14, %c0_15] : memref<16x128xbf16, #tpu.memory_space<vmem>>, vector<16x128xbf16>
    tpu.vector_store %arg6[%c0_14, %c0_15], %26 {strides = array<i32>} : memref<16x128xbf16, #tpu.memory_space<vmem>>, vector<16x128xbf16>,
    return
  }
  func.func @transform_0(%arg0: i32) -> (i32, i32) {
    %c0_i32 = arith.constant 0 : i32
    %c0_i32_0 = arith.constant 0 : i32
    return %arg0, %c0_i32 : i32, i32
  }
  func.func @transform_1(%arg0: i32) -> (i32, i32) {
    %c0_i32 = arith.constant 0 : i32
    %c0_i32_0 = arith.constant 0 : i32
    %c0_i32_1 = arith.constant 0 : i32
    return %c0_i32, %c0_i32_0 : i32, i32
  }
  func.func @transform_2(%arg0: i32) -> (i32, i32) {
    %c0_i32 = arith.constant 0 : i32
    %c0_i32_0 = arith.constant 0 : i32
    %c0_i32_1 = arith.constant 0 : i32
    return %c0_i32, %c0_i32_0 : i32, i32
  }
  func.func @transform_3(%arg0: i32) -> (i32, i32) {
    %c0_i32 = arith.constant 0 : i32
    %c0_i32_0 = arith.constant 0 : i32
    %c0_i32_1 = arith.constant 0 : i32
    return %c0_i32, %c0_i32_0 : i32, i32
  }
  func.func @transform_4(%arg0: i32) -> (i32, i32) {
    %c0_i32 = arith.constant 0 : i32
    %c0_i32_0 = arith.constant 0 : i32
    %c0_i32_1 = arith.constant 0 : i32
    return %c0_i32, %c0_i32_0 : i32, i32
  }
  func.func @transform_5(%arg0: i32) -> (i32, i32) {
    %c0_i32 = arith.constant 0 : i32
    %c0_i32_0 = arith.constant 0 : i32
    return %arg0, %c0_i32 : i32, i32
  }
}

module attributes {stable_mosaic.version = 11 : i64} {
  func.func @_ner_head_kernel(%arg0: i32, %arg1: memref<16x128xf32, #tpu.memory_space<vmem>>, %arg2: memref<128x128xbf16, #tpu.memory_space<vmem>>, %arg3: memref<1x128xf32, #tpu.memory_space<vmem>>, %arg4: memref<128x128xbf16, #tpu.memory_space<vmem>>, %arg5: memref<1x128xf32, #tpu.memory_space<vmem>>, %arg6: memref<16x128xbf16, #tpu.memory_space<vmem>>) attributes {dimension_semantics = [#tpu.dimension_semantics<parallel>], iteration_bounds = array<i64: 1>, scalar_prefetch = 0 : i64, scratch_operands = 0 : i64, tpu.core_type = #tpu.core_type<tc>, window_params = [{transform_indices = @transform_0, window_bounds = array<i64: 16, 128>}, {pipeline_mode = #tpu.pipeline_mode<synchronous>, transform_indices = @transform_1, window_bounds = array<i64: 128, 128>}, {pipeline_mode = #tpu.pipeline_mode<synchronous>, transform_indices = @transform_2, window_bounds = array<i64: 1, 128>}, {pipeline_mode = #tpu.pipeline_mode<synchronous>, transform_indices = @transform_3, window_bounds = array<i64: 128, 128>}, {pipeline_mode = #tpu.pipeline_mode<synchronous>, transform_indices = @transform_4, window_bounds = array<i64: 1, 128>}, {transform_indices = @transform_5, window_bounds = array<i64: 16, 128>}]} {
    %c0 = arith.constant 0 : index
    %c0_0 = arith.constant 0 : index
    %0 = vector.load %arg1[%c0, %c0_0] : memref<16x128xf32, #tpu.memory_space<vmem>>, vector<16x128xf32>
    %1 = arith.truncf %0 : vector<16x128xf32> to vector<16x128xbf16>
    %c0_1 = arith.constant 0 : index
    %c0_2 = arith.constant 0 : index
    %2 = vector.load %arg2[%c0_1, %c0_2] : memref<128x128xbf16, #tpu.memory_space<vmem>>, vector<128x128xbf16>
    %cst = arith.constant dense<0.000000e+00> : vector<16x128xf32>
    %3 = tpu.matmul %1, %2, %cst {dimension_numbers = #tpu.dot_dimension_numbers<[1], [0], [0], [1], [0, 0, 1, 1], [], []>} : vector<16x128xbf16>, vector<128x128xbf16>, vector<16x128xf32> -> vector<16x128xf32>
    %c0_3 = arith.constant 0 : index
    %c0_4 = arith.constant 0 : index
    %4 = vector.load %arg3[%c0_3, %c0_4] : memref<1x128xf32, #tpu.memory_space<vmem>>, vector<1x128xf32>
    %5 = vector.broadcast %4 : vector<1x128xf32> to vector<16x128xf32>
    %6 = arith.addf %3, %5 : vector<16x128xf32>
    %7 = arith.truncf %6 : vector<16x128xf32> to vector<16x128xbf16>
    %8 = arith.mulf %7, %7 : vector<16x128xbf16>
    %9 = arith.mulf %7, %8 : vector<16x128xbf16>
    %cst_5 = arith.constant 4.467770e-02 : bf16
    %10 = vector.broadcast %cst_5 : bf16 to vector<16x128xbf16>
    %11 = arith.mulf %10, %9 : vector<16x128xbf16>
    %12 = arith.addf %7, %11 : vector<16x128xbf16>
    %cst_6 = arith.constant 7.968750e-01 : bf16
    %13 = vector.broadcast %cst_6 : bf16 to vector<16x128xbf16>
    %14 = arith.mulf %13, %12 : vector<16x128xbf16>
    %15 = math.tanh %14 : vector<16x128xbf16>
    %cst_7 = arith.constant 1.000000e+00 : bf16
    %16 = vector.broadcast %cst_7 : bf16 to vector<16x128xbf16>
    %17 = arith.addf %16, %15 : vector<16x128xbf16>
    %cst_8 = arith.constant 5.000000e-01 : bf16
    %18 = vector.broadcast %cst_8 : bf16 to vector<16x128xbf16>
    %19 = arith.mulf %18, %17 : vector<16x128xbf16>
    %20 = arith.mulf %7, %19 : vector<16x128xbf16>
    %c0_9 = arith.constant 0 : index
    %c0_10 = arith.constant 0 : index
    %21 = vector.load %arg4[%c0_9, %c0_10] : memref<128x128xbf16, #tpu.memory_space<vmem>>, vector<128x128xbf16>
    %cst_11 = arith.constant dense<0.000000e+00> : vector<16x128xf32>
    %22 = tpu.matmul %20, %21, %cst_11 {dimension_numbers = #tpu.dot_dimension_numbers<[1], [0], [0], [1], [0, 0, 1, 1], [], []>} : vector<16x128xbf16>, vector<128x128xbf16>, vector<16x128xf32> -> vector<16x128xf32>
    %c0_12 = arith.constant 0 : index
    %c0_13 = arith.constant 0 : index
    %23 = vector.load %arg5[%c0_12, %c0_13] : memref<1x128xf32, #tpu.memory_space<vmem>>, vector<1x128xf32>
    %24 = vector.broadcast %23 : vector<1x128xf32> to vector<16x128xf32>
    %25 = arith.addf %22, %24 : vector<16x128xf32>
    %26 = arith.truncf %25 : vector<16x128xf32> to vector<16x128xbf16>
    %c0_14 = arith.constant 0 : index
    %c0_15 = arith.constant 0 : index
    %27 = vector.load %arg6[%c0_14, %c0_15] : memref<16x128xbf16, #tpu.memory_space<vmem>>, vector<16x128xbf16>
    tpu.vector_store %arg6[%c0_14, %c0_15], %26 {strides = array<i32>} : memref<16x128xbf16, #tpu.memory_space<vmem>>, vector<16x128xbf16>,
    return
  }
  func.func @transform_0(%arg0: i32) -> (i32, i32) {
    %c0_i32 = arith.constant 0 : i32
    %c0_i32_0 = arith.constant 0 : i32
    return %arg0, %c0_i32 : i32, i32
  }
  func.func @transform_1(%arg0: i32) -> (i32, i32) {
    %c0_i32 = arith.constant 0 : i32
    %c0_i32_0 = arith.constant 0 : i32
    %c0_i32_1 = arith.constant 0 : i32
    return %c0_i32, %c0_i32_0 : i32, i32
  }
  func.func @transform_2(%arg0: i32) -> (i32, i32) {
    %c0_i32 = arith.constant 0 : i32
    %c0_i32_0 = arith.constant 0 : i32
    %c0_i32_1 = arith.constant 0 : i32
    return %c0_i32, %c0_i32_0 : i32, i32
  }
  func.func @transform_3(%arg0: i32) -> (i32, i32) {
    %c0_i32 = arith.constant 0 : i32
    %c0_i32_0 = arith.constant 0 : i32
    %c0_i32_1 = arith.constant 0 : i32
    return %c0_i32, %c0_i32_0 : i32, i32
  }
  func.func @transform_4(%arg0: i32) -> (i32, i32) {
    %c0_i32 = arith.constant 0 : i32
    %c0_i32_0 = arith.constant 0 : i32
    %c0_i32_1 = arith.constant 0 : i32
    return %c0_i32, %c0_i32_0 : i32, i32
  }
  func.func @transform_5(%arg0: i32) -> (i32, i32) {
    %c0_i32 = arith.constant 0 : i32
    %c0_i32_0 = arith.constant 0 : i32
    return %arg0, %c0_i32 : i32, i32
  }
}

</mosaic_0001>

<bundles_post_ra>
// kernel: tpu_custom_call.1
= control target key start
LH: loop header
LB: loop body
LE: loop exit
PB: predicated region body
PF: predicated region fallthrough
CT: control target
= control target key end

     0   :  { %10 = vsyncpa [#allocation3], 0  ;;  %s587_s0 = inlined_call_operand.hbm [shape: f32[16,128], index: 0, kind: input, shape index: {}]   ;;  %s588_s1 = inlined_call_operand.hbm [shape: bf16[128,128], index: 1, kind: input, shape index: {}]   ;;  %s589_s2 = inlined_call_operand.vmem [shape: f32[1,128], index: 2, kind: input, shape index: {}]   ;;  %s590_s3 = inlined_call_operand.hbm [shape: bf16[128,128], index: 3, kind: input, shape index: {}]   ;;  %s591_s4 = inlined_call_operand.vmem [shape: f32[1,128], index: 4, kind: input, shape index: {}]   ;;  %s592_s5 = inlined_call_operand.hbm [shape: bf16[16,128], index: 5, kind: output, shape index: {}]  }
   0x1   :  { %11 = vsyncpa [#allocation6], 0  ;;  %s30_s20 = sshll.u32 %s588_s1, 4  ;;  %s31_s20 = int_to_ptr.hbm [resolvable:$true] %s30_s20 }
   0x2   :  { %12 = vsyncpa [#allocation4], 0  ;;  %s515_s21 = smov [#allocation5]   ;;  %s17_s25 = sshll.u32 %s587_s0, 4  ;;  %s18_s25 = int_to_ptr.hbm [resolvable:$true] %s17_s25 }
   0x3   :  { %s32_s22 = sshll.u32 %s515_s21, 4  ;;  %s516_s26 = smov 64   ;;  %s33_s22 = int_to_ptr.vmem [resolvable:$true] %s32_s22 }
   0x4   :  { %s517_s27 = smov 4   ;;  %s518_s28 = smov [#allocation2]  }
   0x5   :  { %38 = dma.hbm_to_vmem [thread:$0]  %s31_s20, 1024, %s33_s22, [#allocation6], %s516_s26, %s516_s26, %s517_s27  }
   0x6   :  { %s19_s29 = sshll.u32 %s518_s28, 4  ;;  %s519_s1 = smov 128   ;;  %s20_s29 = int_to_ptr.vmem [resolvable:$true] %s19_s29 }
   0x7   :  { %s520_s30 = smov 8   ;;  %s45_s8 = sshll.u32 %s590_s3, 4  ;;  %s46_s8 = int_to_ptr.hbm [resolvable:$true] %s45_s8 }
   0x8   :  { %25 = dma.hbm_to_vmem [thread:$0]  %s18_s25, 256, %s20_s29, [#allocation3], %s519_s1, %s519_s1, %s520_s30  }
   0x9   :  { %s521_s9 = smov [#allocation7]  }
   0xa   :  { %s47_s0 = sshll.u32 %s521_s9, 4  ;;  %s48_s0 = int_to_ptr.vmem [resolvable:$true] %s47_s0 }
   0xb   :  { %53 = dma.hbm_to_vmem [thread:$0]  %s46_s8, 1024, %s48_s0, [#allocation6], %s516_s26, %s516_s26, %s517_s27  }
   0xc   :  { %509 = dma.done.wait [#allocation3], 256  }
   0xd   :  { %510 = vsyncadd [#allocation3], 4294967040 }
   0xe   :  { %511 = dma.done.wait [#allocation6], 2048  }
   0xf   :  { %512 = vsyncadd [#allocation6], 4294965248  ;;  %v385_v0 = vld [vmem:[#allocation5 + $0x38] sm:$0xff]  ;;  %v384_v1 = vld [vmem:[#allocation5 + $0x30] sm:$0xff]  ;;  %s522_s12 = smov [#allocation8]   ;;  %s300_s16 = sshll.u32 %s592_s5, 4  ;;  %s301_s16 = int_to_ptr.hbm [resolvable:$true] %s300_s16 }
  0x10   :  { %139 = vmatpush.bf16.msra.mxu0 %v385_v0  ;;  %v383_v2 = vld [vmem:[#allocation5 + $0x28] sm:$0xff]  ;;  %v382_v3 = vld [vmem:[#allocation5 + $0x20] sm:$0xff]  ;;  %v381_v4 = vld [vmem:[#allocation5 + $0x18] sm:$0xff]  ;;  %s298_s13 = sshll.u32 %s522_s12, 4  ;;  %s299_s13 = int_to_ptr.vmem [resolvable:$true] %s298_s13 }
  0x11   :  { %v380_v5 = vld [vmem:[#allocation5 + $0x10] sm:$0xff]  ;;  %v379_v6 = vld [vmem:[#allocation5 + $0x8] sm:$0xff]  ;;  %v378_v7 = vld [vmem:[#allocation5] sm:$0xff] }
  0x12   :  { %v68_v8 = vld [vmem:[#allocation2] sm:$0xff]  ;;  %v69_v9 = vld [vmem:[#allocation2 + $0x8] sm:$0xff]  ;;  %v391_v26 = vld [vmem:[#allocation7 + $0x28] sm:$0xff] }
  0x13   :  { %v70_v10 = vpack.c.bf16 %v69_v9, %v68_v8  ;;  %v407_v11 = vld [vmem:[%s589_s2] ss:$0 sm:$0xff]  ;;  %v393_v17 = vld [vmem:[#allocation7 + $0x38] sm:$0xff]  ;;  %v390_v31 = vld [vmem:[#allocation7 + $0x20] sm:$0xff] }
  0x14   :  { %140 = vmatpush.bf16.msra.mxu0 %v384_v1  ;;  %276 = vmatpush.bf16.msra.mxu1 %v393_v17  ;;  %v392_v21 = vld [vmem:[#allocation7 + $0x30] sm:$0xff]  ;;  %v389_v36 = vld [vmem:[#allocation7 + $0x18] sm:$0xff]  ;;  %v387_v46 = vld [vmem:[#allocation7 + $0x8] sm:$0xff] }
  0x15   :  { %v388_v41 = vld [vmem:[#allocation7 + $0x10] sm:$0xff]  ;;  %v386_v51 = vld [vmem:[#allocation7] sm:$0xff] }
  0x16   :  { %v408_v17 = vld [vmem:[%s591_s4] ss:$0 sm:$0xff] }
  0x18   :  { %141 = vmatpush.bf16.msra.mxu0 %v383_v2  ;;  %277 = vmatpush.bf16.msra.mxu1 %v392_v21 }
  0x1c   :  { %142 = vmatpush.bf16.msra.mxu0 %v382_v3  ;;  %278 = vmatpush.bf16.msra.mxu1 %v391_v26 }
  0x20   :  { %143 = vmatpush.bf16.msra.mxu0 %v381_v4  ;;  %279 = vmatpush.bf16.msra.mxu1 %v390_v31 }
  0x24   :  { %144 = vmatpush.bf16.msra.mxu0 %v380_v5  ;;  %280 = vmatpush.bf16.msra.mxu1 %v389_v36 }
  0x28   :  { %145 = vmatpush.bf16.msra.mxu0 %v379_v6  ;;  %281 = vmatpush.bf16.msra.mxu1 %v388_v41 }
  0x2c   :  { %146 = vmatpush.bf16.msra.mxu0 %v378_v7  ;;  %282 = vmatpush.bf16.msra.mxu1 %v387_v46 }
  0x2f   :  { %147 = vmatmul.bf16.vlgmr.msra.gmra.mxu0 %v70_v10 }
  0x30   :  { %283 = vmatpush.bf16.msra.mxu1 %v386_v51 }
  0xac   :  { %v148_v12 = vpop.f32.mrf.mxu0 }
  0xad   :  { %v149_v13 = vadd.f32 %v407_v11, %v148_v12 }
  0xaf   :  { %v153_v14 = vpack.c.bf16 %v149_v13, %v149_v13 }
  0xb1   :  { %v571_v15 = vunpack.c.l.bf16 %v153_v14 }
  0xb3   :  { %v157_v16 = vmul.f32 %v571_v15, %v571_v15 }
  0xb4   :  { %v150_v18 = vpop.f32.mrf.mxu0 }
  0xb5   :  { %v159_v19 = vpack.c.bf16 %v157_v16, %v157_v16  ;;  %v151_v20 = vadd.f32 %v407_v11, %v150_v18 }
  0xb7   :  { %v161_v22 = vunpack.c.l.bf16 %v159_v19  ;;  %v154_v23 = vpack.c.bf16 %v151_v20, %v151_v20 }
  0xb9   :  { %v163_v24 = vmul.f32 %v161_v22, %v571_v15  ;;  %v156_v25 = vunpack.c.l.bf16 %v154_v23 }
  0xbb   :  { %v165_v27 = vpack.c.bf16 %v163_v24, %v163_v24  ;;  %v158_v28 = vmul.f32 %v156_v25, %v156_v25 }
  0xbd   :  { %v167_v29 = vunpack.c.l.bf16 %v165_v27  ;;  %v160_v30 = vpack.c.bf16 %v158_v28, %v158_v28 }
  0xbf   :  { %v169_v32 = vmul.f32 0.044677734, %v167_v29  ;;  %v162_v33 = vunpack.c.l.bf16 %v160_v30 }
  0xc1   :  { %v171_v34 = vpack.c.bf16 %v169_v32, %v169_v32  ;;  %v164_v35 = vmul.f32 %v162_v33, %v156_v25 }
  0xc3   :  { %v173_v37 = vunpack.c.l.bf16 %v171_v34  ;;  %v166_v38 = vpack.c.bf16 %v164_v35, %v164_v35 }
  0xc5   :  { %v175_v39 = vadd.f32 %v173_v37, %v571_v15  ;;  %v168_v40 = vunpack.c.l.bf16 %v166_v38 }
  0xc7   :  { %v177_v42 = vpack.c.bf16 %v175_v39, %v175_v39  ;;  %v170_v43 = vmul.f32 0.044677734, %v168_v40 }
  0xc9   :  { %v179_v44 = vunpack.c.l.bf16 %v177_v42  ;;  %v172_v45 = vpack.c.bf16 %v170_v43, %v170_v43 }
  0xcb   :  { %v181_v47 = vmul.f32 0.796875, %v179_v44  ;;  %v174_v48 = vunpack.c.l.bf16 %v172_v45 }
  0xcd   :  { %v183_v49 = vpack.c.bf16 %v181_v47, %v181_v47  ;;  %v176_v50 = vadd.f32 %v174_v48, %v156_v25 }
  0xcf   :  { %v178_v52 = vpack.c.bf16 %v176_v50, %v176_v50  ;;  %v185_v53 = vunpack.c.l.bf16 %v183_v49 }
  0xd1   :  { %v180_v54 = vunpack.c.l.bf16 %v178_v52  ;;  %409 = vtanh.f32 %v185_v53 }
  0xd3   :  { %v182_v55 = vmul.f32 0.796875, %v180_v54 }
  0xd5   :  { %v184_v56 = vpack.c.bf16 %v182_v55, %v182_v55 }
  0xd7   :  { %v410_v57 = vpop.eup %409  ;;  %v186_v58 = vunpack.c.l.bf16 %v184_v56 }
  0xd8   :  { %v189_v59 = vpack.c.bf16 %v410_v57, %v410_v57 }
  0xd9   :  { %411 = vtanh.f32 %v186_v58 }
  0xda   :  { %v191_v60 = vunpack.c.l.bf16 %v189_v59 }
  0xdc   :  { %v193_v61 = vadd.f32 1.0, %v191_v60 }
  0xde   :  { %v195_v62 = vpack.c.bf16 %v193_v61, %v193_v61 }
  0xdf   :  { %v412_v63 = vpop.eup %411 }
  0xe0   :  { %v190_v0 = vpack.c.bf16 %v412_v63, %v412_v63  ;;  %v197_v1 = vunpack.c.l.bf16 %v195_v62 }
  0xe2   :  { %v192_v2 = vunpack.c.l.bf16 %v190_v0  ;;  %v199_v4 = vmul.f32 0.5, %v197_v1 }
  0xe4   :  { %v194_v3 = vadd.f32 1.0, %v192_v2  ;;  %v201_v7 = vpack.c.bf16 %v199_v4, %v199_v4 }
  0xe6   :  { %v196_v5 = vpack.c.bf16 %v194_v3, %v194_v3  ;;  %v203_v10 = vunpack.c.l.bf16 %v201_v7 }
  0xe8   :  { %v198_v6 = vunpack.c.l.bf16 %v196_v5  ;;  %v205_v12 = vmul.f32 %v203_v10, %v571_v15 }
  0xea   :  { %v200_v8 = vmul.f32 0.5, %v198_v6 }
  0xec   :  { %v202_v9 = vpack.c.bf16 %v200_v8, %v200_v8 }
  0xee   :  { %v204_v11 = vunpack.c.l.bf16 %v202_v9 }
  0xf0   :  { %v206_v13 = vmul.f32 %v204_v11, %v156_v25 }
  0xf2   :  { %v207_v14 = vpack.c.bf16 %v206_v13, %v205_v12 }
  0xf4   :  { %284 = vmatmul.bf16.vlgmr.msra.gmra.mxu1 %v207_v14 }
 0x171   :  { %v285_v16 = vpop.f32.mrf.mxu1 }
 0x172   :  { %v286_v19 = vadd.f32 %v408_v17, %v285_v16 }
 0x179   :  { %v287_v18 = vpop.f32.mrf.mxu1 }
 0x17a   :  { %v288_v20 = vadd.f32 %v408_v17, %v287_v18 }
 0x17c   :  { %v397_v21 = vpack.c.bf16 %v288_v20, %v286_v19 }
 0x17e   :  { %398 = vst [vmem:[#allocation8] sm:$0xff] %v397_v21  }
 0x17f   :  { %306 = dma.vmem_to_hbm [thread:$0]  %s299_s13, 128, %s301_s16, [#allocation4], %s516_s26, %s516_s26, %s517_s27  }
 0x180   :  { %513 = dma.done.wait [#allocation4], 128  }
 0x181   :  { %514 = vsyncadd [#allocation4], 4294967168 }
 0x182   :  { %311 = vsyncpa [#allocation3], 1 }
 0x183   :  { %312 = vsyncpa [#allocation6], 1 }
 0x184   :  { %313 = vsyncpa [#allocation4], 1 }

// kernel: tpu_custom_call.1
= control target key start
LH: loop header
LB: loop body
LE: loop exit
PB: predicated region body
PF: predicated region fallthrough
CT: control target
= control target key end

     0   :  { %10 = vsyncpa [#allocation3], 0  ;;  %s587_s0 = inlined_call_operand.hbm [shape: f32[16,128], index: 0, kind: input, shape index: {}]   ;;  %s588_s1 = inlined_call_operand.hbm [shape: bf16[128,128], index: 1, kind: input, shape index: {}]   ;;  %s589_s2 = inlined_call_operand.vmem [shape: f32[1,128], index: 2, kind: input, shape index: {}]   ;;  %s590_s3 = inlined_call_operand.hbm [shape: bf16[128,128], index: 3, kind: input, shape index: {}]   ;;  %s591_s4 = inlined_call_operand.vmem [shape: f32[1,128], index: 4, kind: input, shape index: {}]   ;;  %s592_s5 = inlined_call_operand.hbm [shape: bf16[16,128], index: 5, kind: output, shape index: {}]  }
   0x1   :  { %11 = vsyncpa [#allocation6], 0  ;;  %s30_s20 = sshll.u32 %s588_s1, 4  ;;  %s31_s20 = int_to_ptr.hbm [resolvable:$true] %s30_s20 }
   0x2   :  { %12 = vsyncpa [#allocation4], 0  ;;  %s515_s21 = smov [#allocation5]   ;;  %s17_s25 = sshll.u32 %s587_s0, 4  ;;  %s18_s25 = int_to_ptr.hbm [resolvable:$true] %s17_s25 }
   0x3   :  { %s32_s22 = sshll.u32 %s515_s21, 4  ;;  %s516_s26 = smov 64   ;;  %s33_s22 = int_to_ptr.vmem [resolvable:$true] %s32_s22 }
   0x4   :  { %s517_s27 = smov 4   ;;  %s518_s28 = smov [#allocation2]  }
   0x5   :  { %38 = dma.hbm_to_vmem [thread:$0]  %s31_s20, 1024, %s33_s22, [#allocation6], %s516_s26, %s516_s26, %s517_s27  }
   0x6   :  { %s19_s29 = sshll.u32 %s518_s28, 4  ;;  %s519_s1 = smov 128   ;;  %s20_s29 = int_to_ptr.vmem [resolvable:$true] %s19_s29 }
   0x7   :  { %s520_s30 = smov 8   ;;  %s45_s8 = sshll.u32 %s590_s3, 4  ;;  %s46_s8 = int_to_ptr.hbm [resolvable:$true] %s45_s8 }
   0x8   :  { %25 = dma.hbm_to_vmem [thread:$0]  %s18_s25, 256, %s20_s29, [#allocation3], %s519_s1, %s519_s1, %s520_s30  }
   0x9   :  { %s521_s9 = smov [#allocation7]  }
   0xa   :  { %s47_s0 = sshll.u32 %s521_s9, 4  ;;  %s48_s0 = int_to_ptr.vmem [resolvable:$true] %s47_s0 }
   0xb   :  { %53 = dma.hbm_to_vmem [thread:$0]  %s46_s8, 1024, %s48_s0, [#allocation6], %s516_s26, %s516_s26, %s517_s27  }
   0xc   :  { %509 = dma.done.wait [#allocation3], 256  }
   0xd   :  { %510 = vsyncadd [#allocation3], 4294967040 }
   0xe   :  { %511 = dma.done.wait [#allocation6], 2048  }
   0xf   :  { %512 = vsyncadd [#allocation6], 4294965248  ;;  %v385_v0 = vld [vmem:[#allocation5 + $0x38] sm:$0xff]  ;;  %v384_v1 = vld [vmem:[#allocation5 + $0x30] sm:$0xff]  ;;  %s522_s12 = smov [#allocation8]   ;;  %s300_s16 = sshll.u32 %s592_s5, 4  ;;  %s301_s16 = int_to_ptr.hbm [resolvable:$true] %s300_s16 }
  0x10   :  { %139 = vmatpush.bf16.msra.mxu0 %v385_v0  ;;  %v383_v2 = vld [vmem:[#allocation5 + $0x28] sm:$0xff]  ;;  %v382_v3 = vld [vmem:[#allocation5 + $0x20] sm:$0xff]  ;;  %v381_v4 = vld [vmem:[#allocation5 + $0x18] sm:$0xff]  ;;  %s298_s13 = sshll.u32 %s522_s12, 4  ;;  %s299_s13 = int_to_ptr.vmem [resolvable:$true] %s298_s13 }
  0x11   :  { %v380_v5 = vld [vmem:[#allocation5 + $0x10] sm:$0xff]  ;;  %v379_v6 = vld [vmem:[#allocation5 + $0x8] sm:$0xff]  ;;  %v378_v7 = vld [vmem:[#allocation5] sm:$0xff] }
  0x12   :  { %v68_v8 = vld [vmem:[#allocation2] sm:$0xff]  ;;  %v69_v9 = vld [vmem:[#allocation2 + $0x8] sm:$0xff]  ;;  %v391_v26 = vld [vmem:[#allocation7 + $0x28] sm:$0xff] }
  0x13   :  { %v70_v10 = vpack.c.bf16 %v69_v9, %v68_v8  ;;  %v407_v11 = vld [vmem:[%s589_s2] ss:$0 sm:$0xff]  ;;  %v393_v17 = vld [vmem:[#allocation7 + $0x38] sm:$0xff]  ;;  %v390_v31 = vld [vmem:[#allocation7 + $0x20] sm:$0xff] }
  0x14   :  { %140 = vmatpush.bf16.msra.mxu0 %v384_v1  ;;  %276 = vmatpush.bf16.msra.mxu1 %v393_v17  ;;  %v392_v21 = vld [vmem:[#allocation7 + $0x30] sm:$0xff]  ;;  %v389_v36 = vld [vmem:[#allocation7 + $0x18] sm:$0xff]  ;;  %v387_v46 = vld [vmem:[#allocation7 + $0x8] sm:$0xff] }
  0x15   :  { %v388_v41 = vld [vmem:[#allocation7 + $0x10] sm:$0xff]  ;;  %v386_v51 = vld [vmem:[#allocation7] sm:$0xff] }
  0x16   :  { %v408_v17 = vld [vmem:[%s591_s4] ss:$0 sm:$0xff] }
  0x18   :  { %141 = vmatpush.bf16.msra.mxu0 %v383_v2  ;;  %277 = vmatpush.bf16.msra.mxu1 %v392_v21 }
  0x1c   :  { %142 = vmatpush.bf16.msra.mxu0 %v382_v3  ;;  %278 = vmatpush.bf16.msra.mxu1 %v391_v26 }
  0x20   :  { %143 = vmatpush.bf16.msra.mxu0 %v381_v4  ;;  %279 = vmatpush.bf16.msra.mxu1 %v390_v31 }
  0x24   :  { %144 = vmatpush.bf16.msra.mxu0 %v380_v5  ;;  %280 = vmatpush.bf16.msra.mxu1 %v389_v36 }
  0x28   :  { %145 = vmatpush.bf16.msra.mxu0 %v379_v6  ;;  %281 = vmatpush.bf16.msra.mxu1 %v388_v41 }
  0x2c   :  { %146 = vmatpush.bf16.msra.mxu0 %v378_v7  ;;  %282 = vmatpush.bf16.msra.mxu1 %v387_v46 }
  0x2f   :  { %147 = vmatmul.bf16.vlgmr.msra.gmra.mxu0 %v70_v10 }
  0x30   :  { %283 = vmatpush.bf16.msra.mxu1 %v386_v51 }
  0xac   :  { %v148_v12 = vpop.f32.mrf.mxu0 }
  0xad   :  { %v149_v13 = vadd.f32 %v407_v11, %v148_v12 }
  0xaf   :  { %v153_v14 = vpack.c.bf16 %v149_v13, %v149_v13 }
  0xb1   :  { %v571_v15 = vunpack.c.l.bf16 %v153_v14 }
  0xb3   :  { %v157_v16 = vmul.f32 %v571_v15, %v571_v15 }
  0xb4   :  { %v150_v18 = vpop.f32.mrf.mxu0 }
  0xb5   :  { %v159_v19 = vpack.c.bf16 %v157_v16, %v157_v16  ;;  %v151_v20 = vadd.f32 %v407_v11, %v150_v18 }
  0xb7   :  { %v161_v22 = vunpack.c.l.bf16 %v159_v19  ;;  %v154_v23 = vpack.c.bf16 %v151_v20, %v151_v20 }
  0xb9   :  { %v163_v24 = vmul.f32 %v161_v22, %v571_v15  ;;  %v156_v25 = vunpack.c.l.bf16 %v154_v23 }
  0xbb   :  { %v165_v27 = vpack.c.bf16 %v163_v24, %v163_v24  ;;  %v158_v28 = vmul.f32 %v156_v25, %v156_v25 }
  0xbd   :  { %v167_v29 = vunpack.c.l.bf16 %v165_v27  ;;  %v160_v30 = vpack.c.bf16 %v158_v28, %v158_v28 }
  0xbf   :  { %v169_v32 = vmul.f32 0.044677734, %v167_v29  ;;  %v162_v33 = vunpack.c.l.bf16 %v160_v30 }
  0xc1   :  { %v171_v34 = vpack.c.bf16 %v169_v32, %v169_v32  ;;  %v164_v35 = vmul.f32 %v162_v33, %v156_v25 }
  0xc3   :  { %v173_v37 = vunpack.c.l.bf16 %v171_v34  ;;  %v166_v38 = vpack.c.bf16 %v164_v35, %v164_v35 }
  0xc5   :  { %v175_v39 = vadd.f32 %v173_v37, %v571_v15  ;;  %v168_v40 = vunpack.c.l.bf16 %v166_v38 }
  0xc7   :  { %v177_v42 = vpack.c.bf16 %v175_v39, %v175_v39  ;;  %v170_v43 = vmul.f32 0.044677734, %v168_v40 }
  0xc9   :  { %v179_v44 = vunpack.c.l.bf16 %v177_v42  ;;  %v172_v45 = vpack.c.bf16 %v170_v43, %v170_v43 }
  0xcb   :  { %v181_v47 = vmul.f32 0.796875, %v179_v44  ;;  %v174_v48 = vunpack.c.l.bf16 %v172_v45 }
  0xcd   :  { %v183_v49 = vpack.c.bf16 %v181_v47, %v181_v47  ;;  %v176_v50 = vadd.f32 %v174_v48, %v156_v25 }
  0xcf   :  { %v178_v52 = vpack.c.bf16 %v176_v50, %v176_v50  ;;  %v185_v53 = vunpack.c.l.bf16 %v183_v49 }
  0xd1   :  { %v180_v54 = vunpack.c.l.bf16 %v178_v52  ;;  %409 = vtanh.f32 %v185_v53 }
  0xd3   :  { %v182_v55 = vmul.f32 0.796875, %v180_v54 }
  0xd5   :  { %v184_v56 = vpack.c.bf16 %v182_v55, %v182_v55 }
  0xd7   :  { %v410_v57 = vpop.eup %409  ;;  %v186_v58 = vunpack.c.l.bf16 %v184_v56 }
  0xd8   :  { %v189_v59 = vpack.c.bf16 %v410_v57, %v410_v57 }
  0xd9   :  { %411 = vtanh.f32 %v186_v58 }
  0xda   :  { %v191_v60 = vunpack.c.l.bf16 %v189_v59 }
  0xdc   :  { %v193_v61 = vadd.f32 1.0, %v191_v60 }
  0xde   :  { %v195_v62 = vpack.c.bf16 %v193_v61, %v193_v61 }
  0xdf   :  { %v412_v63 = vpop.eup %411 }
  0xe0   :  { %v190_v0 = vpack.c.bf16 %v412_v63, %v412_v63  ;;  %v197_v1 = vunpack.c.l.bf16 %v195_v62 }
  0xe2   :  { %v192_v2 = vunpack.c.l.bf16 %v190_v0  ;;  %v199_v4 = vmul.f32 0.5, %v197_v1 }
  0xe4   :  { %v194_v3 = vadd.f32 1.0, %v192_v2  ;;  %v201_v7 = vpack.c.bf16 %v199_v4, %v199_v4 }
  0xe6   :  { %v196_v5 = vpack.c.bf16 %v194_v3, %v194_v3  ;;  %v203_v10 = vunpack.c.l.bf16 %v201_v7 }
  0xe8   :  { %v198_v6 = vunpack.c.l.bf16 %v196_v5  ;;  %v205_v12 = vmul.f32 %v203_v10, %v571_v15 }
  0xea   :  { %v200_v8 = vmul.f32 0.5, %v198_v6 }
  0xec   :  { %v202_v9 = vpack.c.bf16 %v200_v8, %v200_v8 }
  0xee   :  { %v204_v11 = vunpack.c.l.bf16 %v202_v9 }
  0xf0   :  { %v206_v13 = vmul.f32 %v204_v11, %v156_v25 }
  0xf2   :  { %v207_v14 = vpack.c.bf16 %v206_v13, %v205_v12 }
  0xf4   :  { %284 = vmatmul.bf16.vlgmr.msra.gmra.mxu1 %v207_v14 }
 0x171   :  { %v285_v16 = vpop.f32.mrf.mxu1 }
 0x172   :  { %v286_v19 = vadd.f32 %v408_v17, %v285_v16 }
 0x179   :  { %v287_v18 = vpop.f32.mrf.mxu1 }
 0x17a   :  { %v288_v20 = vadd.f32 %v408_v17, %v287_v18 }
 0x17c   :  { %v397_v21 = vpack.c.bf16 %v288_v20, %v286_v19 }
 0x17e   :  { %398 = vst [vmem:[#allocation8] sm:$0xff] %v397_v21  }
 0x17f   :  { %306 = dma.vmem_to_hbm [thread:$0]  %s299_s13, 128, %s301_s16, [#allocation4], %s516_s26, %s516_s26, %s517_s27  }
 0x180   :  { %513 = dma.done.wait [#allocation4], 128  }
 0x181   :  { %514 = vsyncadd [#allocation4], 4294967168 }
 0x182   :  { %311 = vsyncpa [#allocation3], 1 }
 0x183   :  { %312 = vsyncpa [#allocation6], 1 }
 0x184   :  { %313 = vsyncpa [#allocation4], 1 }

</bundles_post_ra>
